<compile_context>
chip_gen: v5e
topology: v5e:2x2
jax: 0.10.0
libtpu: 0.0.40
codegen_flags: <defaults>
</compile_context>

<pallas_src>
import jax
import jax.numpy as jnp
from jax import lax
from jax.experimental import pallas as pl
from jax.experimental.pallas import tpu as pltpu

_LANES = 128  # TPU vreg lane width


def _xcorr_nhwc_kernel(z_ref, x_ref, o_ref):
    """Depthwise x-corr for one (batch, channel-tile) grid step.

    Channels-last blocks (channel tile on the 128-lane axis):
      z_ref: (1, Hz, Wz, Ct)  template features
      x_ref: (1, Hx, Wx, Ct)  search   features
      o_ref: (1, Ho, Wo, Ct)  response map
    """
    Hz, Wz = z_ref.shape[1], z_ref.shape[2]
    _, Ho, Wo, Ct = o_ref.shape

    def p_body(p, acc):
        # Only the Ho search rows needed for template row p (keeps the live
        # vreg working set small), plus the matching template row.
        x_rows = x_ref[0, pl.ds(p, Ho), :, :]        # (Ho, Wx, Ct)
        z_row = z_ref[0, pl.ds(p, 1), :, :]          # (1,  Wz, Ct)
        # Small static inner loop over template columns; each tap is a
        # lane-dense (Ct on lanes) VPU multiply-accumulate.
        for q in range(Wz):
            window = x_rows[:, q:q + Wo, :]          # (Ho, Wo, Ct)
            tap = z_row[:, q:q + 1, :]               # (1, 1, Ct) -> broadcast
            acc = acc + (window * tap).astype(jnp.float32)
        return acc

    acc = lax.fori_loop(0, Hz, p_body, jnp.zeros((Ho, Wo, Ct), jnp.float32))
    o_ref[0] = acc.astype(o_ref.dtype)


def rpn_forward(z_f, x_f, *, c_tile=_LANES):
    """RPN.forward(z_f, x_f): depthwise cross-correlation. NCHW in / NCHW out."""
    B, C, Hz, Wz = z_f.shape
    Bx, Cx, Hx, Wx = x_f.shape
    assert B == Bx and C == Cx, "z_f / x_f must agree on batch and channels"
    assert Hx >= Hz and Wx >= Wz, "search map must be >= template map"
    Ho, Wo = Hx - Hz + 1, Wx - Wz + 1
    out_dtype = x_f.dtype

    # Channels-last so C maps to the 128-lane axis; pad C to the channel tile.
    z_nhwc = jnp.transpose(z_f, (0, 2, 3, 1))
    x_nhwc = jnp.transpose(x_f, (0, 2, 3, 1))
    c_tile = max(_LANES, (c_tile // _LANES) * _LANES)
    c_pad = ((C + c_tile - 1) // c_tile) * c_tile
    if c_pad != C:
        pad = [(0, 0), (0, 0), (0, 0), (0, c_pad - C)]
        z_nhwc = jnp.pad(z_nhwc, pad)
        x_nhwc = jnp.pad(x_nhwc, pad)
    n_ct = c_pad // c_tile

    # Explicit VMEM budget (double-buffered in/out blocks + slack); keeps the
    # kernel within v7x's smaller scoped VMEM while being ample for v5e/v6e.
    elem_bytes = jnp.dtype(out_dtype).itemsize
    blk_bytes = (Hz * Wz + Hx * Wx + Ho * Wo) * c_tile * elem_bytes
    vmem_limit = min(32 * 1024 * 1024, max(4 * 1024 * 1024, 4 * blk_bytes))

    out = pl.pallas_call(
        _xcorr_nhwc_kernel,
        out_shape=jax.ShapeDtypeStruct((B, Ho, Wo, c_pad), out_dtype),
        grid=(B, n_ct),
        in_specs=[
            pl.BlockSpec((1, Hz, Wz, c_tile), lambda b, c: (b, 0, 0, c)),
            pl.BlockSpec((1, Hx, Wx, c_tile), lambda b, c: (b, 0, 0, c)),
        ],
        out_specs=pl.BlockSpec((1, Ho, Wo, c_tile), lambda b, c: (b, 0, 0, c)),
        compiler_params=pltpu.CompilerParams(
            dimension_semantics=("parallel", "parallel"),
            vmem_limit_bytes=int(vmem_limit)),
    )(z_nhwc, x_nhwc)

    # Drop channel padding and return in NCHW to match the PyTorch interface.
    return jnp.transpose(out[..., :C], (0, 3, 1, 2))


def _reference_xcorr(z_f, x_f):
    """Pure-JAX reference for correctness checking."""
    B, C, Hz, Wz = z_f.shape
    _, _, Hx, Wx = x_f.shape
    Ho, Wo = Hx - Hz + 1, Wx - Wz + 1
    out = jnp.zeros((B, C, Ho, Wo), jnp.float32)
    for p in range(Hz):
        for q in range(Wz):
            out = out + (x_f[:, :, p:p + Ho, q:q + Wo].astype(jnp.float32)
                         * z_f[:, :, p, q][:, :, None, None].astype(jnp.float32))
    return out.astype(x_f.dtype)


if __name__ == "__main__":
    key = jax.random.PRNGKey(0)
    kz, kx = jax.random.split(key)

    # Small shapes consistent with an RPN head: template 8x8 over search 16x16.
    B, C = 2, 4
    z_f = jax.random.normal(kz, (B, C, 8, 8), dtype=jnp.float32)
    x_f = jax.random.normal(kx, (B, C, 16, 16), dtype=jnp.float32)

    out = rpn_forward(z_f, x_f)
    out = jax.block_until_ready(out)

    ref = _reference_xcorr(z_f, x_f)
    assert out.shape == (B, C, 9, 9), out.shape
    assert jnp.allclose(out, ref, atol=1e-4, rtol=1e-4), "mismatch vs reference"

    print("KERNEL_OK")
</pallas_src>

<mosaic_0001>
module attributes {stable_mosaic.version = 11 : i64} {
  func.func @_xcorr_nhwc_kernel(%arg0: i32, %arg1: i32, %arg2: memref<1x8x8x128xf32, #tpu.memory_space<vmem>>, %arg3: memref<1x16x16x128xf32, #tpu.memory_space<vmem>>, %arg4: memref<1x9x9x128xf32, #tpu.memory_space<vmem>>) attributes {dimension_semantics = [#tpu.dimension_semantics<parallel>, #tpu.dimension_semantics<parallel>], iteration_bounds = array<i64: 2, 1>, scalar_prefetch = 0 : i64, scratch_operands = 0 : i64, tpu.core_type = #tpu.core_type<tc>, window_params = [{transform_indices = @transform_0, window_bounds = array<i64: 1, 8, 8, 128>}, {transform_indices = @transform_1, window_bounds = array<i64: 1, 16, 16, 128>}, {transform_indices = @transform_2, window_bounds = array<i64: 1, 9, 9, 128>}]} {
    %cst = arith.constant 0.000000e+00 : f32
    %0 = vector.broadcast %cst : f32 to vector<9x9x128xf32>
    %c0_i32 = arith.constant 0 : i32
    %c8_i32 = arith.constant 8 : i32
    %1 = arith.addi %c0_i32, %c8_i32 : i32
    %c1_i32 = arith.constant 1 : i32
    %2 = scf.for %arg5 = %c0_i32 to %1 step %c1_i32 iter_args(%arg6 = %0) -> (vector<9x9x128xf32>)  : i32 {
      %c0_4 = arith.constant 0 : index
      %6 = arith.index_cast %arg5 : i32 to index
      %c0_5 = arith.constant 0 : index
      %c0_6 = arith.constant 0 : index
      %7 = vector.load %arg3[%c0_4, %6, %c0_5, %c0_6] : memref<1x16x16x128xf32, #tpu.memory_space<vmem>>, vector<1x9x16x128xf32>
      %8 = vector.shape_cast %7 : vector<1x9x16x128xf32> to vector<9x16x128xf32>
      %c0_7 = arith.constant 0 : index
      %9 = arith.index_cast %arg5 : i32 to index
      %c0_8 = arith.constant 0 : index
      %c0_9 = arith.constant 0 : index
      %10 = vector.load %arg2[%c0_7, %9, %c0_8, %c0_9] : memref<1x8x8x128xf32, #tpu.memory_space<vmem>>, vector<1x1x8x128xf32>
      %11 = vector.shape_cast %10 : vector<1x1x8x128xf32> to vector<1x8x128xf32>
      %12 = vector.extract_strided_slice %8 {offsets = [0, 0, 0], sizes = [9, 9, 128], strides = [1, 1, 1]} : vector<9x16x128xf32> to vector<9x9x128xf32>
      %13 = vector.extract_strided_slice %11 {offsets = [0, 0, 0], sizes = [1, 1, 128], strides = [1, 1, 1]} : vector<1x8x128xf32> to vector<1x1x128xf32>
      %14 = vector.broadcast %13 : vector<1x1x128xf32> to vector<9x9x128xf32>
      %15 = arith.mulf %12, %14 : vector<9x9x128xf32>
      %16 = arith.addf %arg6, %15 : vector<9x9x128xf32>
      %17 = vector.extract_strided_slice %8 {offsets = [0, 1, 0], sizes = [9, 9, 128], strides = [1, 1, 1]} : vector<9x16x128xf32> to vector<9x9x128xf32>
      %18 = vector.extract_strided_slice %11 {offsets = [0, 1, 0], sizes = [1, 1, 128], strides = [1, 1, 1]} : vector<1x8x128xf32> to vector<1x1x128xf32>
      %19 = vector.broadcast %18 : vector<1x1x128xf32> to vector<9x9x128xf32>
      %20 = arith.mulf %17, %19 : vector<9x9x128xf32>
      %21 = arith.addf %16, %20 : vector<9x9x128xf32>
      %22 = vector.extract_strided_slice %8 {offsets = [0, 2, 0], sizes = [9, 9, 128], strides = [1, 1, 1]} : vector<9x16x128xf32> to vector<9x9x128xf32>
      %23 = vector.extract_strided_slice %11 {offsets = [0, 2, 0], sizes = [1, 1, 128], strides = [1, 1, 1]} : vector<1x8x128xf32> to vector<1x1x128xf32>
      %24 = vector.broadcast %23 : vector<1x1x128xf32> to vector<9x9x128xf32>
      %25 = arith.mulf %22, %24 : vector<9x9x128xf32>
      %26 = arith.addf %21, %25 : vector<9x9x128xf32>
      %27 = vector.extract_strided_slice %8 {offsets = [0, 3, 0], sizes = [9, 9, 128], strides = [1, 1, 1]} : vector<9x16x128xf32> to vector<9x9x128xf32>
      %28 = vector.extract_strided_slice %11 {offsets = [0, 3, 0], sizes = [1, 1, 128], strides = [1, 1, 1]} : vector<1x8x128xf32> to vector<1x1x128xf32>
      %29 = vector.broadcast %28 : vector<1x1x128xf32> to vector<9x9x128xf32>
      %30 = arith.mulf %27, %29 : vector<9x9x128xf32>
      %31 = arith.addf %26, %30 : vector<9x9x128xf32>
      %32 = vector.extract_strided_slice %8 {offsets = [0, 4, 0], sizes = [9, 9, 128], strides = [1, 1, 1]} : vector<9x16x128xf32> to vector<9x9x128xf32>
      %33 = vector.extract_strided_slice %11 {offsets = [0, 4, 0], sizes = [1, 1, 128], strides = [1, 1, 1]} : vector<1x8x128xf32> to vector<1x1x128xf32>
      %34 = vector.broadcast %33 : vector<1x1x128xf32> to vector<9x9x128xf32>
      %35 = arith.mulf %32, %34 : vector<9x9x128xf32>
      %36 = arith.addf %31, %35 : vector<9x9x128xf32>
      %37 = vector.extract_strided_slice %8 {offsets = [0, 5, 0], sizes = [9, 9, 128], strides = [1, 1, 1]} : vector<9x16x128xf32> to vector<9x9x128xf32>
      %38 = vector.extract_strided_slice %11 {offsets = [0, 5, 0], sizes = [1, 1, 128], strides = [1, 1, 1]} : vector<1x8x128xf32> to vector<1x1x128xf32>
      %39 = vector.broadcast %38 : vector<1x1x128xf32> to vector<9x9x128xf32>
      %40 = arith.mulf %37, %39 : vector<9x9x128xf32>
      %41 = arith.addf %36, %40 : vector<9x9x128xf32>
      %42 = vector.extract_strided_slice %8 {offsets = [0, 6, 0], sizes = [9, 9, 128], strides = [1, 1, 1]} : vector<9x16x128xf32> to vector<9x9x128xf32>
      %43 = vector.extract_strided_slice %11 {offsets = [0, 6, 0], sizes = [1, 1, 128], strides = [1, 1, 1]} : vector<1x8x128xf32> to vector<1x1x128xf32>
      %44 = vector.broadcast %43 : vector<1x1x128xf32> to vector<9x9x128xf32>
      %45 = arith.mulf %42, %44 : vector<9x9x128xf32>
      %46 = arith.addf %41, %45 : vector<9x9x128xf32>
      %47 = vector.extract_strided_slice %8 {offsets = [0, 7, 0], sizes = [9, 9, 128], strides = [1, 1, 1]} : vector<9x16x128xf32> to vector<9x9x128xf32>
      %48 = vector.extract_strided_slice %11 {offsets = [0, 7, 0], sizes = [1, 1, 128], strides = [1, 1, 1]} : vector<1x8x128xf32> to vector<1x1x128xf32>
      %49 = vector.broadcast %48 : vector<1x1x128xf32> to vector<9x9x128xf32>
      %50 = arith.mulf %47, %49 : vector<9x9x128xf32>
      %51 = arith.addf %46, %50 : vector<9x9x128xf32>
      scf.yield %51 : vector<9x9x128xf32>
    }
    %c8_i32_0 = arith.constant 8 : i32
    %c0 = arith.constant 0 : index
    %c0_1 = arith.constant 0 : index
    %c0_2 = arith.constant 0 : index
    %c0_3 = arith.constant 0 : index
    %3 = vector.load %arg4[%c0, %c0_1, %c0_2, %c0_3] : memref<1x9x9x128xf32, #tpu.memory_space<vmem>>, vector<1x9x9x128xf32>
    %4 = vector.shape_cast %3 : vector<1x9x9x128xf32> to vector<9x9x128xf32>
    %5 = vector.shape_cast %2 : vector<9x9x128xf32> to vector<1x9x9x128xf32>
    tpu.vector_store %arg4[%c0, %c0_1, %c0_2, %c0_3], %5 {strides = array<i32>} : memref<1x9x9x128xf32, #tpu.memory_space<vmem>>, vector<1x9x9x128xf32>,
    return
  }
  func.func @transform_0(%arg0: i32, %arg1: i32) -> (i32, i32, i32, i32) {
    %c0_i32 = arith.constant 0 : i32
    %c0_i32_0 = arith.constant 0 : i32
    %c0_i32_1 = arith.constant 0 : i32
    return %arg0, %c0_i32, %c0_i32_0, %arg1 : i32, i32, i32, i32
  }
  func.func @transform_1(%arg0: i32, %arg1: i32) -> (i32, i32, i32, i32) {
    %c0_i32 = arith.constant 0 : i32
    %c0_i32_0 = arith.constant 0 : i32
    %c0_i32_1 = arith.constant 0 : i32
    return %arg0, %c0_i32, %c0_i32_0, %arg1 : i32, i32, i32, i32
  }
  func.func @transform_2(%arg0: i32, %arg1: i32) -> (i32, i32, i32, i32) {
    %c0_i32 = arith.constant 0 : i32
    %c0_i32_0 = arith.constant 0 : i32
    %c0_i32_1 = arith.constant 0 : i32
    return %arg0, %c0_i32, %c0_i32_0, %arg1 : i32, i32, i32, i32
  }
}

</mosaic_0001>

<bundles_post_ra>
// kernel: tpu_custom_call.1
= control target key start
LH: loop header
LB: loop body
LE: loop exit
PB: predicated region body
PF: predicated region fallthrough
CT: control target
= control target key end

     0   :  { %7 = vsyncpa [#allocation3], 0  ;;  %s2713_s0 = inlined_call_operand.hbm [shape: f32[2,8,8,128], index: 0, kind: input, shape index: {}]   ;;  %s2714_s1 = inlined_call_operand.hbm [shape: f32[2,16,16,128], index: 1, kind: input, shape index: {}]   ;;  %s2715_s2 = inlined_call_operand.vmem [shape: f32[2,9,9,128], index: 2, kind: output, shape index: {}]  }
   0x1   :  { %9 = vsyncpa [#allocation3 + $0x1], 0 }
   0x2   :  { %10 = vsyncpa [#allocation5], 0 }
   0x3   :  { %12 = vsyncpa [#allocation5 + $0x1], 0  ;;  %s1742_s9 = smov 0   ;;  %s1744_s10 = smov 0  }
   0x4   :  { %s1746_s11 = smov 0   ;;  %s1748_s12 = smov 0  }
   0x5   :  { %s1750_s13 = smov 0   ;;  %s1752_s14 = smov 0  }
   0x6 LB: > { %s1222_s15 = sadd.s32 4294967295, %s1647_s14   ;;  %s30_s16 = sadd.s32 1, %s1643_s13  ;;  %s1647_s14 = sphi %s1752_s14, %s18_s14   ;;  %s1643_s13 = sphi %s1750_s13, %s2838_s13   ;;  %s1639_s12 = sphi %s1748_s12, %s2837_s12   ;;  %s1635_s11 = sphi %s1746_s11, %s2836_s11   ;;  %s1631_s10 = sphi %s1744_s10, %s2835_s10   ;;  %s1627_s9 = sphi %s1742_s9, %s2834_s9  }
   0x7   : > { %p32_p0 = scmp.ge.s32.totalorder %s30_s16, 2  ;;  %s39_s17 = sadd.s32 1, %s1635_s11 }
   0x8   : > { %p46_p1 = scmp.ne.s32.totalorder %s1635_s11, %s1631_s10  ;;  %p47_p2 = scmp.eq.s32.totalorder %s1647_s14, 0 }
   0x9   : > { %s2840_s16 = smov (%p32_p0, %s30_s16), 0  ;;  %p52_p4 = scmp.ne.s32.totalorder %s1631_s10, %s1627_s9 }
   0xa   : > { %p1778_p3 = por %p47_p2, %p46_p1  ;;  %s34_s19 = ssub.s32 %s1643_s13, %s2840_s16 }
   0xb   : > { %p53_p5 = scmp.eq.s32.totalorder %s1222_s15, 0  ;;  %p37_p6 = scmp.eq.s32.totalorder %s34_s19, 0 }
   0xc   : > { %p1254_p8 = scmp.lt.s32.totalorder %s1647_s14, 2  ;;  %s1794_s22 = sand.u32 1, %s1635_s11  }
   0xd   : > { %p1785_p7 = por %p53_p5, %p52_p4  ;;  %s1240_s23 = sshll.u32 %s1643_s13, 6 }
   0xe   : > { %s1791_s21 = scalar_select %p37_p6, %s1635_s11, %s39_s17  }
   0xf   : > { %s1226_s24 = sshll.u32 %s1794_s22, 6  ;;  %s142_s27 = scalar_lea.hbm %s2713_s0, %s1240_s23 }
  0x10   : > { %s143_s28 = sshll.u32 %s142_s27, 4  ;;  %s136_s29 = scalar_lea.vmem [#allocation2], %s1226_s24  ;;  %s144_s28 = int_to_ptr.hbm [resolvable:$true] %s143_s28 }
  0x11   : > { %s145_s30 = sshll.u32 %s136_s29, 4  ;;  %p1803_p9 = pnand %p1254_p8, %p1778_p3  ;;  %s146_s30 = int_to_ptr.vmem [resolvable:$true] %s145_s30 }
  0x12   : > { %p1232_p10 = scmp.ge.s32.totalorder %s1647_s14, 1  ;;  %p176_p11 = scmp.lt.s32.totalorder %s1647_s14, 3 }
  0x13   : > { %s133_s4 = scalar_lea.sflag [#allocation3], %s1794_s22  ;;  %s1725_s5 = smov 128  }
  0x14   : > { %s1726_s6 = smov 8   ;;  %p177_p12 = pnand %p1232_p10, %p176_p11 }
  0x15   : > { %1250 = dma.hbm_to_vmem [thread:$0]  (!%p1803_p9), %s144_s28, 1024, %s146_s30, %s133_s4, %s1725_s5, %s1725_s5, %s1726_s6  }
  0x16   : > { %s1229_s7 = sshll.u32 %s1794_s22, 8  ;;  %s1241_s8 = sshll.u32 %s1643_s13, 8 }
  0x17   : > { %s165_s17 = scalar_lea.hbm %s2714_s1, %s1241_s8  ;;  %s159_s19 = scalar_lea.vmem [#allocation4], %s1229_s7 }
  0x18   : > { %s166_s18 = sshll.u32 %s165_s17, 4  ;;  %s168_s23 = sshll.u32 %s159_s19, 4  ;;  %s167_s18 = int_to_ptr.hbm [resolvable:$true] %s166_s18  ;;  %s169_s23 = int_to_ptr.vmem [resolvable:$true] %s168_s23 }
  0x19   : > { %s156_s24 = scalar_lea.sflag [#allocation5], %s1794_s22  ;;  %180 = sbr.rel (%p177_p12) target bundleno = 182 (0xb6), region = 28 }
  0x1a   : > { %1253 = dma.hbm_to_vmem [thread:$0]  (!%p1803_p9), %s167_s18, 4096, %s169_s23, %s156_s24, %s1725_s5, %s1725_s5, %s1726_s6  }
  0x1b   : > { %s182_s25 = sand.u32 (!%p177_p12), 1, %s1631_s10  }
  0x1c   : > { %s1233_s26 = sshll.u32 (!%p177_p12), %s182_s25, 6  ;;  %s183_s27 = scalar_lea.sflag (!%p177_p12), [#allocation3], %s182_s25 }
  0x1d   : > { %s1821_s28 = scalar_lea.vmem (!%p177_p12), [#allocation2], %s1233_s26 }
  0x1e   : > { %1618 = dma.done.wait (%p1785_p7), %s183_s27, 1024  }
  0x1f   : > { %1620 = vsyncadd (%p1785_p7), %s183_s27, 4294966272  ;;  %s1234_s29 = sshll.u32 %s182_s25, 8  ;;  %s193_s30 = scalar_lea.sflag [#allocation5], %s182_s25 }
  0x20   : > { %s1827_s4 = scalar_lea.vmem [#allocation4], %s1234_s29 }
  0x21   : > { %1622 = dma.done.wait (%p1785_p7), %s193_s30, 4096  }
  0x22   : > { %1624 = vsyncadd (%p1785_p7), %s193_s30, 4294963200  ;;  %p226_p13 = scmp.lt.s32.totalorder %s1639_s12, 1  ;;  %v1840_v0 = vmov 0.0   ;;  %v1842_v1 = vmov 0.0   ;;  %v1844_v2 = vmov 0.0   ;;  %v1846_v3 = vmov 0.0  }
  0x23   : > { %v1848_v4 = vmov 0.0   ;;  %v1850_v5 = vmov 0.0   ;;  %v1852_v6 = vmov 0.0   ;;  %v1854_v7 = vmov 0.0  }
  0x24   : > { %s2842_s12 = smov (!%p226_p13, %s1639_s12), 1  ;;  %v1856_v8 = vmov 0.0   ;;  %v1858_v9 = vmov 0.0   ;;  %v1860_v10 = vmov 0.0   ;;  %v1862_v11 = vmov 0.0  }
  0x25   : > { %s1242_s22 = smul.u32 144, %s2842_s12  ;;  %v1864_v12 = vmov 0.0   ;;  %v1866_v13 = vmov 0.0   ;;  %v1868_v14 = vmov 0.0   ;;  %v1870_v15 = vmov 0.0   ;;  %s1876_s12 = smov 0  }
  0x26   : > { %v1872_v16 = vmov 0.0   ;;  %v1874_v17 = vmov 0.0  }
  0x27   : > { %s1838_s6 = scalar_lea.vmem %s2715_s2, %s1242_s22 }
  0x28 LB: >> { %2749 = vst [vmem:[#allocation8_spill] sm:$0xff] %v1651_v0  ;;  %s1236_s20 = sshll.u32 %s1723_s12, 4  ;;  %s1237_s7 = sshll.u32 %s1723_s12, 3  ;;  %vm355_vm0 = vcmask 1046528   ;;  %vm456_vm1 = vcmask 1045504   ;;  %vm557_vm2 = vcmask 1044480   ;;  %s1723_s12 = sphi %s1876_s12, %s239_s12   ;;  %v1719_v17 = vphi %v1874_v17, %v2833_v17   ;;  %v1715_v16 = vphi %v1872_v16, %v2832_v16   ;;  %v1711_v15 = vphi %v1870_v15, %v2831_v15   ;;  %v1707_v14 = vphi %v1868_v14, %v2830_v14   ;;  %v1703_v13 = vphi %v1866_v13, %v2829_v13   ;;  %v1699_v12 = vphi %v1864_v12, %v2828_v12   ;;  %v1695_v11 = vphi %v1862_v11, %v2827_v11   ;;  %v1691_v10 = vphi %v1860_v10, %v2826_v10   ;;  %v1687_v9 = vphi %v1858_v9, %v2825_v9   ;;  %v1683_v8 = vphi %v1856_v8, %v2824_v8   ;;  %v1679_v7 = vphi %v1854_v7, %v2823_v7   ;;  %v1675_v6 = vphi %v1852_v6, %v2822_v6   ;;  %v1671_v5 = vphi %v1850_v5, %v2821_v5   ;;  %v1667_v4 = vphi %v1848_v4, %v2820_v4   ;;  %v1663_v3 = vphi %v1846_v3, %v2819_v3   ;;  %v1659_v2 = vphi %v1844_v2, %v2818_v2   ;;  %v1655_v1 = vphi %v1842_v1, %v2817_v1   ;;  %v1651_v0 = vphi %v1840_v0, %v2816_v0  }
  0x29   : >> { %s259_s8 = scalar_lea.vmem %s1827_s4, %s1236_s20 [#allocation4]  ;;  %s279_s9 = scalar_lea.vmem %s1821_s28, %s1237_s7 [#allocation2]  ;;  %vm658_vm3 = vcmask 1043456   ;;  %vm759_vm4 = vcmask 1042432   ;;  %vm860_vm5 = vcmask 1041408   ;;  %vm961_vm6 = vcmask 1040384  }
  0x2a   : >> { %v1923_v18 = vld [vmem:[%s259_s8] sm:$0xff]  ;;  %v1925_v19 = vld [vmem:[%s259_s8 + $0x8] sm:$0xff]  ;;  %v1927_v20 = vld [vmem:[%s259_s8 + $0x10] sm:$0xff]  ;;  %s239_s12 = sadd.s32 1, %s1723_s12  }
  0x2b   : >> { %v1929_v21 = vld [vmem:[%s279_s9] sm:$0xff]  ;;  %v1931_v22 = vld [vmem:[%s259_s8 + $0x18] sm:$0xff]  ;;  %v1935_v24 = vld [vmem:[%s259_s8 + $0x28] sm:$0xff]  ;;  %p2633_p0 = scmp.ge.s32.totalorder %s239_s12, 8  }
  0x2c   : >> { %2750 = vst [vmem:[#allocation9_spill] sm:$0xff] %v1929_v21  ;;  %v1933_v23 = vld [vmem:[%s259_s8 + $0x20] sm:$0xff]  ;;  %v281_v25 = vperm.slane %v1929_v21, 0  ;;  %v1938_v26 = vld [vmem:[%s259_s8 + $0x30] sm:$0xff]  ;;  %v1940_v27 = vld [vmem:[%s259_s8 + $0x38] sm:$0xff]  ;;  %v1951_v32 = vperm.slane %v1929_v21, 1 }
  0x2d   : >> { %2751 = vst [vmem:[#allocation10_spill] sm:$0xff] %v1940_v27  ;;  %v1942_v28 = vld [vmem:[%s259_s8 + $0x40] sm:$0xff]  ;;  %v1944_v29 = vld [vmem:[%s259_s8 + $0x48] sm:$0xff]  ;;  %v1946_v30 = vld [vmem:[%s259_s8 + $0x50] sm:$0xff]  ;;  %v1963_v39 = vperm.slane %v1929_v21, 2 }
  0x2e   : >> { %2752 = vst [vmem:[#allocation11_spill] sm:$0xff] %v1942_v28  ;;  %v1948_v31 = vld [vmem:[%s259_s8 + $0x58] sm:$0xff]  ;;  %v1953_v33 = vld [vmem:[%s259_s8 + $0x60] sm:$0xff]  ;;  %v1955_v34 = vld [vmem:[%s259_s8 + $0x68] sm:$0xff]  ;;  %v282_v36 = vmul.f32 %v281_v25, %v1923_v18  ;;  %v283_v37 = vmul.f32 %v281_v25, %v1925_v19  ;;  %v284_v38 = vmul.f32 %v281_v25, %v1927_v20  ;;  %v285_v43 = vmul.f32 %v281_v25, %v1931_v22 }
  0x2f   : >> { %2753 = vst [vmem:[#allocation12_spill] sm:$0xff] %v1944_v29  ;;  %v1957_v35 = vld [vmem:[%s259_s8 + $0x70] sm:$0xff]  ;;  %v1965_v40 = vld [vmem:[%s259_s8 + $0x78] sm:$0xff]  ;;  %v1967_v41 = vld [vmem:[%s259_s8 + $0x80] sm:$0xff]  ;;  %v286_v44 = vmul.f32 %v281_v25, %v1933_v23  ;;  %v287_v45 = vmul.f32 %v281_v25, %v1935_v24  ;;  %v288_v46 = vmul.f32 %v281_v25, %v1938_v26  ;;  %v289_v47 = vmul.f32 %v281_v25, %v1940_v27 }
  0x30   : >> { %2754 = vst [vmem:[#allocation13_spill] sm:$0xff] %v1946_v30  ;;  %v1969_v42 = vld [vmem:[%s259_s8 + $0x88] sm:$0xff]  ;;  %v290_v48 = vmul.f32 %v281_v25, %v1942_v28  ;;  %v291_v49 = vmul.f32 %v281_v25, %v1944_v29  ;;  %v292_v50 = vmul.f32 %v281_v25, %v1946_v30  ;;  %v293_v51 = vmul.f32 %v281_v25, %v1948_v31 }
  0x31   : >> { %2755 = vst [vmem:[#allocation14_spill] sm:$0xff] %v1948_v31  ;;  %v294_v52 = vmul.f32 %v281_v25, %v1953_v33  ;;  %v295_v53 = vmul.f32 %v281_v25, %v1955_v34  ;;  %v296_v54 = vmul.f32 %v281_v25, %v1957_v35  ;;  %v297_v55 = vmul.f32 %v281_v25, %v1965_v40 }
  0x32   : >> { %2756 = vst [vmem:[#allocation15_spill] sm:$0xff] %v1953_v33  ;;  %v298_v56 = vmul.f32 %v281_v25, %v1967_v41  ;;  %v299_v57 = vmul.f32 %v281_v25, %v1969_v42  ;;  %v1986_v58 = vadd.f32 %v1719_v17, %v282_v36  ;;  %v1988_v59 = vadd.f32 %v1715_v16, %v283_v37 }
  0x33   : >> { %2757 = vst [vmem:[#allocation16_spill] sm:$0xff] %v1955_v34  ;;  %v1990_v60 = vadd.f32 %v1711_v15, %v284_v38  ;;  %v1992_v61 = vadd.f32 %v1707_v14, %v285_v43  ;;  %v1994_v62 = vadd.f32 %v1703_v13, %v286_v44  ;;  %v1996_v63 = vadd.f32 %v1699_v12, %v287_v45 }
  0x34   : >> { %2758 = vst [vmem:[#allocation17_spill] sm:$0xff] %v1957_v35  ;;  %v1998_v21 = vadd.f32 %v1695_v11, %v288_v46  ;;  %v2003_v0 = vadd.f32 %v1687_v9, %v290_v48  ;;  %v2006_v17 = vadd.f32 %v1683_v8, %v291_v49  ;;  %v2009_v15 = vadd.f32 %v1679_v7, %v292_v50 }
  0x35   : >> { %2759 = vst [vmem:[#allocation18_spill] sm:$0xff] %v1963_v39  ;;  %v2000_v39 = vadd.f32 %v1691_v10, %v289_v47  ;;  %v2012_v14 = vadd.f32 %v1675_v6, %v293_v51  ;;  %v2015_v13 = vadd.f32 %v1671_v5, %v294_v52  ;;  %v2018_v11 = vadd.f32 %v1667_v4, %v295_v53 }
  0x36   : >> { %2760 = vst [vmem:[#allocation19_spill] sm:$0xff] %v1965_v40  ;;  %v2021_v10 = vadd.f32 %v1663_v3, %v296_v54  ;;  %v319_v9 = vmul.f32 %v1951_v32, %v1923_v18  ;;  %v320_v8 = vmul.f32 %v1951_v32, %v1925_v19  ;;  %v315_v7 = vadd.f32 %v1659_v2, %v297_v55 }
  0x37   : >> { %2761 = vst [vmem:[#allocation20_spill] sm:$0xff] %v1967_v41  ;;  %v321_v6 = vmul.f32 %v1951_v32, %v1927_v20  ;;  %v322_v5 = vmul.f32 %v1951_v32, %v1931_v22  ;;  %v323_v4 = vmul.f32 %v1951_v32, %v1933_v23  ;;  %v324_v3 = vmul.f32 %v1951_v32, %v1935_v24 }
  0x38   : >> { %2762 = vst [vmem:[#allocation21_spill] sm:$0xff] %v1969_v42  ;;  %v325_v12 = vmul.f32 %v1951_v32, %v1938_v26  ;;  %v326_v16 = vmul.f32 %v1951_v32, %v1940_v27  ;;  %v327_v2 = vmul.f32 %v1951_v32, %v1942_v28  ;;  %v328_v25 = vmul.f32 %v1951_v32, %v1944_v29 }
  0x39   : >> { %v329_v36 = vmul.f32 %v1951_v32, %v1946_v30  ;;  %v330_v37 = vmul.f32 %v1951_v32, %v1948_v31  ;;  %v331_v38 = vmul.f32 %v1951_v32, %v1953_v33  ;;  %v332_v43 = vmul.f32 %v1951_v32, %v1955_v34 }
  0x3a   : >> { %v333_v44 = vmul.f32 %v1951_v32, %v1957_v35  ;;  %v356_v45 = vrot.slane %v319_v9, 1  ;;  %v357_v46 = vrot.slane %v320_v8, 1  ;;  %v334_v47 = vmul.f32 %v1951_v32, %v1965_v40 }
  0x3b   : >> { %v335_v48 = vmul.f32 %v1951_v32, %v1967_v41  ;;  %v359_v49 = vrot.slane %v321_v6, 1  ;;  %v360_v50 = vrot.slane %v322_v5, 1  ;;  %v2060_v51 = vmul.f32 %v1951_v32, %v1969_v42  ;;  %v2763_v42 = vld [vmem:[#allocation8_spill] sm:$0xff] }
  0x3c   : >> { %v362_v52 = vrot.slane %v323_v4, 1  ;;  %v363_v53 = vrot.slane %v324_v3, 1  ;;  %v365_v54 = vrot.slane %v325_v12, 1  ;;  %v366_v55 = vrot.slane %v326_v16, 1 }
  0x3d   : >> { %v368_v34 = vrot.slane %v327_v2, 1  ;;  %v369_v35 = vrot.slane %v328_v25, 1  ;;  %v371_v9 = vrot.slane %v329_v36, 1  ;;  %v358_v8 = vsel %vm355_vm0, %v356_v45, %v357_v46  ;;  %v2766_v45 = vld [vmem:[#allocation14_spill] sm:$0xff] }
  0x3e   : >> { %v372_v33 = vrot.slane %v330_v37, 1  ;;  %v374_v40 = vrot.slane %v331_v38, 1  ;;  %v375_v31 = vrot.slane %v332_v43, 1  ;;  %v361_v41 = vsel %vm355_vm0, %v359_v49, %v360_v50  ;;  %v2765_v43 = vld [vmem:[#allocation13_spill] sm:$0xff]  ;;  %v2768_v49 = vld [vmem:[#allocation16_spill] sm:$0xff] }
  0x3f   : >> { %v377_v6 = vrot.slane %v333_v44, 1  ;;  %v378_v5 = vrot.slane %v334_v47, 1  ;;  %v380_v30 = vrot.slane %v335_v48, 1  ;;  %v316_v32 = vadd.f32 %v1655_v1, %v298_v56  ;;  %v2767_v47 = vld [vmem:[#allocation15_spill] sm:$0xff] }
  0x40   : >> { %v2066_v4 = vadd.f32 %v2763_v42, %v299_v57  ;;  %v364_v3 = vsel %vm355_vm0, %v362_v52, %v363_v53  ;;  %v381_v12 = vrot.slane %v2060_v51, 1  ;;  %v367_v16 = vsel %vm355_vm0, %v365_v54, %v366_v55  ;;  %v2769_v51 = vld [vmem:[#allocation17_spill] sm:$0xff] }
  0x41   : >> { %v370_v2 = vsel %vm355_vm0, %v368_v34, %v369_v35  ;;  %v373_v25 = vsel %vm355_vm0, %v371_v9, %v372_v33  ;;  %v376_v36 = vsel %vm355_vm0, %v374_v40, %v375_v31  ;;  %v379_v37 = vsel %vm355_vm0, %v377_v6, %v378_v5 }
  0x42   : >> { %v2076_v38 = vadd.f32 %v358_v8, %v1986_v58  ;;  %v2079_v1 = vadd.f32 %v357_v46, %v1988_v59  ;;  %v2082_v42 = vadd.f32 %v361_v41, %v1990_v60  ;;  %v382_v56 = vsel %vm355_vm0, %v380_v30, %v381_v12  ;;  %v2771_v8 = vld [vmem:[#allocation20_spill] sm:$0xff] }
  0x43   : >> { %v2086_v57 = vadd.f32 %v360_v50, %v1992_v61  ;;  %v2089_v34 = vadd.f32 %v364_v3, %v1994_v62  ;;  %v2092_v40 = vadd.f32 %v363_v53, %v1996_v63  ;;  %v2095_v58 = vadd.f32 %v367_v16, %v1998_v21  ;;  %v2770_v53 = vld [vmem:[#allocation19_spill] sm:$0xff] }
  0x44   : >> { %v2098_v59 = vadd.f32 %v366_v55, %v2000_v39  ;;  %v2101_v41 = vadd.f32 %v370_v2, %v2003_v0  ;;  %v2104_v30 = vadd.f32 %v369_v35, %v2006_v17  ;;  %v2107_v60 = vadd.f32 %v373_v25, %v2009_v15  ;;  %v2764_v35 = vld [vmem:[#allocation18_spill] sm:$0xff] }
  0x45   : >> { %v2110_v61 = vadd.f32 %v372_v33, %v2012_v14  ;;  %v2113_v62 = vadd.f32 %v376_v36, %v2015_v13  ;;  %v2116_v21 = vadd.f32 %v375_v31, %v2018_v11  ;;  %v2119_v39 = vadd.f32 %v379_v37, %v2021_v10 }
  0x46   : >> { %v2121_v0 = vadd.f32 %v378_v5, %v315_v7  ;;  %v420_v63 = vmul.f32 %v2764_v35, %v1923_v18  ;;  %v421_v17 = vmul.f32 %v2764_v35, %v1925_v19  ;;  %v422_v33 = vmul.f32 %v2764_v35, %v1927_v20  ;;  %v2772_v5 = vld [vmem:[#allocation21_spill] sm:$0xff] }
  0x47   : >> { %v423_v15 = vmul.f32 %v2764_v35, %v1931_v22  ;;  %v424_v31 = vmul.f32 %v2764_v35, %v1933_v23  ;;  %v425_v14 = vmul.f32 %v2764_v35, %v1935_v24  ;;  %v426_v13 = vmul.f32 %v2764_v35, %v1938_v26 }
  0x48   : >> { %v427_v11 = vmul.f32 %v2764_v35, %v1940_v27  ;;  %v428_v10 = vmul.f32 %v2764_v35, %v1942_v28  ;;  %v429_v7 = vmul.f32 %v2764_v35, %v1944_v29  ;;  %v430_v44 = vmul.f32 %v2764_v35, %v2765_v43 }
  0x49   : >> { %v431_v46 = vmul.f32 %v2764_v35, %v2766_v45  ;;  %v432_v48 = vmul.f32 %v2764_v35, %v2767_v47  ;;  %v433_v50 = vmul.f32 %v2764_v35, %v2768_v49  ;;  %v434_v52 = vmul.f32 %v2764_v35, %v2769_v51 }
  0x4a   : >> { %v435_v54 = vmul.f32 %v2764_v35, %v2770_v53  ;;  %v457_v55 = vrot.slane %v420_v63, 2  ;;  %v458_v9 = vrot.slane %v421_v17, 2  ;;  %v436_v6 = vmul.f32 %v2764_v35, %v2771_v8 }
  0x4b   : >> { %v437_v3 = vmul.f32 %v2764_v35, %v2772_v5  ;;  %v460_v16 = vrot.slane %v422_v33, 2  ;;  %v461_v2 = vrot.slane %v423_v15, 2  ;;  %v463_v25 = vrot.slane %v424_v31, 2 }
  0x4c   : >> { %v464_v36 = vrot.slane %v425_v14, 2  ;;  %v466_v37 = vrot.slane %v426_v13, 2  ;;  %v467_v49 = vrot.slane %v427_v11, 2  ;;  %v469_v47 = vrot.slane %v428_v10, 2 }
  0x4d   : >> { %v470_v45 = vrot.slane %v429_v7, 2  ;;  %v472_v51 = vrot.slane %v430_v44, 2  ;;  %v473_v43 = vrot.slane %v431_v46, 2  ;;  %v417_v29 = vadd.f32 %v382_v56, %v316_v32 }
  0x4e   : >> { %v459_v63 = vsel %vm456_vm1, %v457_v55, %v458_v9  ;;  %v475_v17 = vrot.slane %v432_v48, 2  ;;  %v476_v53 = vrot.slane %v433_v50, 2  ;;  %v462_v8 = vsel %vm456_vm1, %v460_v16, %v461_v2  ;;  %v2777_v50 = vld [vmem:[#allocation11_spill] sm:$0xff]  ;;  %v2782_v16 = vld [vmem:[#allocation16_spill] sm:$0xff] }
  0x4f   : >> { %v478_v28 = vrot.slane %v434_v52, 2  ;;  %v479_v27 = vrot.slane %v435_v54, 2  ;;  %v481_v35 = vrot.slane %v436_v6, 2  ;;  %v418_v33 = vadd.f32 %v381_v12, %v2066_v4  ;;  %v2778_v52 = vld [vmem:[#allocation12_spill] sm:$0xff]  ;;  %v2779_v54 = vld [vmem:[#allocation13_spill] sm:$0xff]  ;;  %v2781_v6 = vld [vmem:[#allocation15_spill] sm:$0xff] }
  0x50   : >> { %v465_v15 = vsel %vm456_vm1, %v463_v25, %v464_v36  ;;  %v468_v31 = vsel %vm456_vm1, %v466_v37, %v467_v49  ;;  %v482_v14 = vrot.slane %v437_v3, 2  ;;  %v471_v13 = vsel %vm456_vm1, %v469_v47, %v470_v45  ;;  %v2783_v25 = vld [vmem:[#allocation17_spill] sm:$0xff]  ;;  %v2784_v37 = vld [vmem:[#allocation19_spill] sm:$0xff] }
  0x51   : >> { %v474_v32 = vsel %vm456_vm1, %v472_v51, %v473_v43  ;;  %v477_v56 = vsel %vm456_vm1, %v475_v17, %v476_v53  ;;  %v2168_v11 = vadd.f32 %v459_v63, %v2076_v38  ;;  %v480_v10 = vsel %vm456_vm1, %v478_v28, %v479_v27  ;;  %v2785_v17 = vld [vmem:[#allocation20_spill] sm:$0xff] }
  0x52   : >> { %v2172_v7 = vadd.f32 %v458_v9, %v2079_v1  ;;  %v2175_v4 = vadd.f32 %v462_v8, %v2082_v42  ;;  %v2178_v12 = vadd.f32 %v461_v2, %v2086_v57  ;;  %v483_v44 = vsel %vm456_vm1, %v481_v35, %v482_v14  ;;  %v2780_v9 = vld [vmem:[#allocation14_spill] sm:$0xff] }
  0x53   : >> { %v2182_v46 = vadd.f32 %v465_v15, %v2089_v34  ;;  %v2185_v47 = vadd.f32 %v464_v36, %v2092_v40  ;;  %v2188_v38 = vadd.f32 %v468_v31, %v2095_v58  ;;  %v2191_v28 = vadd.f32 %v467_v49, %v2098_v59  ;;  %v2773_v59 = vld [vmem:[#allocation9_spill] sm:$0xff] }
  0x54   : >> { %v2194_v1 = vadd.f32 %v471_v13, %v2101_v41  ;;  %v2197_v42 = vadd.f32 %v470_v45, %v2104_v30  ;;  %v2200_v57 = vadd.f32 %v474_v32, %v2107_v60  ;;  %v2203_v34 = vadd.f32 %v473_v43, %v2110_v61 }
  0x55   : >> { %v2206_v40 = vadd.f32 %v477_v56, %v2113_v62  ;;  %v2209_v58 = vadd.f32 %v476_v53, %v2116_v21  ;;  %v520_v48 = vperm.slane %v2773_v59, 3  ;;  %v2213_v41 = vadd.f32 %v480_v10, %v2119_v39 }
  0x56   : >> { %v2216_v30 = vadd.f32 %v479_v27, %v2121_v0  ;;  %v2218_v45 = vadd.f32 %v483_v44, %v417_v29  ;;  %v2220_v60 = vadd.f32 %v482_v14, %v418_v33  ;;  %v2776_v0 = vld [vmem:[#allocation10_spill] sm:$0xff] }
  0x57   : >> { %v521_v61 = vmul.f32 %v520_v48, %v1923_v18  ;;  %v522_v62 = vmul.f32 %v520_v48, %v1925_v19  ;;  %v523_v43 = vmul.f32 %v520_v48, %v1927_v20  ;;  %v524_v21 = vmul.f32 %v520_v48, %v1931_v22 }
  0x58   : >> { %2774 = vst [vmem:[#allocation8_spill] sm:$0xff] %v2218_v45  ;;  %v525_v49 = vmul.f32 %v520_v48, %v1933_v23  ;;  %v526_v39 = vmul.f32 %v520_v48, %v1935_v24  ;;  %v527_v27 = vmul.f32 %v520_v48, %v1938_v26  ;;  %v528_v29 = vmul.f32 %v520_v48, %v2776_v0 }
  0x59   : >> { %2775 = vst [vmem:[#allocation18_spill] sm:$0xff] %v2220_v60  ;;  %v529_v51 = vmul.f32 %v520_v48, %v2777_v50  ;;  %v530_v53 = vmul.f32 %v520_v48, %v2778_v52  ;;  %v531_v55 = vmul.f32 %v520_v48, %v2779_v54  ;;  %v532_v8 = vmul.f32 %v520_v48, %v2780_v9 }
  0x5a   : >> { %v533_v3 = vmul.f32 %v520_v48, %v2781_v6  ;;  %v534_v2 = vmul.f32 %v520_v48, %v2782_v16  ;;  %v535_v36 = vmul.f32 %v520_v48, %v2783_v25  ;;  %v536_v63 = vmul.f32 %v520_v48, %v2784_v37 }
  0x5b   : >> { %v537_v35 = vmul.f32 %v520_v48, %v2785_v17  ;;  %v558_v33 = vrot.slane %v521_v61, 3  ;;  %v559_v15 = vrot.slane %v522_v62, 3  ;;  %v2240_v31 = vmul.f32 %v520_v48, %v2772_v5 }
  0x5c   : >> { %v561_v14 = vrot.slane %v523_v43, 3  ;;  %v562_v13 = vrot.slane %v524_v21, 3  ;;  %v564_v32 = vrot.slane %v525_v49, 3  ;;  %v565_v56 = vrot.slane %v526_v39, 3 }
  0x5d   : >> { %v567_v10 = vrot.slane %v527_v27, 3  ;;  %v568_v44 = vrot.slane %v528_v29, 3  ;;  %v570_v60 = vrot.slane %v529_v51, 3  ;;  %v571_v45 = vrot.slane %v530_v53, 3 }
  0x5e   : >> { %v573_v16 = vrot.slane %v531_v55, 3  ;;  %v621_v25 = vperm.slane %v2773_v59, 4  ;;  %v2244_v37 = vperm.slane %v2773_v59, 5  ;;  %v560_v61 = vsel %vm557_vm2, %v558_v33, %v559_v15 }
  0x5f   : >> { %v574_v62 = vrot.slane %v532_v8, 3  ;;  %v576_v17 = vrot.slane %v533_v3, 3  ;;  %v577_v48 = vrot.slane %v534_v2, 3  ;;  %v563_v43 = vsel %vm557_vm2, %v561_v14, %v562_v13 }
  0x60   : >> { %v579_v21 = vrot.slane %v535_v36, 3  ;;  %v580_v49 = vrot.slane %v536_v63, 3  ;;  %v582_v39 = vrot.slane %v537_v35, 3  ;;  %v566_v27 = vsel %vm557_vm2, %v564_v32, %v565_v56 }
  0x61   : >> { %v569_v29 = vsel %vm557_vm2, %v567_v10, %v568_v44  ;;  %v572_v51 = vsel %vm557_vm2, %v570_v60, %v571_v45  ;;  %v583_v53 = vrot.slane %v2240_v31, 3  ;;  %v575_v55 = vsel %vm557_vm2, %v573_v16, %v574_v62 }
  0x62   : >> { %v578_v33 = vsel %vm557_vm2, %v576_v17, %v577_v48  ;;  %v581_v8 = vsel %vm557_vm2, %v579_v21, %v580_v49  ;;  %v2256_v3 = vadd.f32 %v560_v61, %v2168_v11  ;;  %v2260_v36 = vadd.f32 %v559_v15, %v2172_v7 }
  0x63   : >> { %v584_v2 = vsel %vm557_vm2, %v582_v39, %v583_v53  ;;  %v2263_v63 = vadd.f32 %v563_v43, %v2175_v4  ;;  %v2266_v60 = vadd.f32 %v562_v13, %v2178_v12  ;;  %v2269_v16 = vadd.f32 %v566_v27, %v2182_v46  ;;  %v2789_v43 = vld [vmem:[#allocation20_spill] sm:$0xff] }
  0x64   : >> { %v2272_v17 = vadd.f32 %v565_v56, %v2185_v47  ;;  %v2275_v11 = vadd.f32 %v569_v29, %v2188_v38  ;;  %v2278_v35 = vadd.f32 %v568_v44, %v2191_v28  ;;  %v2281_v7 = vadd.f32 %v572_v51, %v2194_v1  ;;  %v2786_v56 = vld [vmem:[#allocation16_spill] sm:$0xff]  ;;  %v2787_v44 = vld [vmem:[#allocation17_spill] sm:$0xff] }
  0x65   : >> { %v2284_v4 = vadd.f32 %v571_v45, %v2197_v42  ;;  %v2287_v12 = vadd.f32 %v575_v55, %v2200_v57  ;;  %v2290_v46 = vadd.f32 %v574_v62, %v2203_v34  ;;  %v2293_v47 = vadd.f32 %v578_v33, %v2206_v40  ;;  %v2788_v62 = vld [vmem:[#allocation19_spill] sm:$0xff] }
  0x66   : >> { %v2296_v38 = vadd.f32 %v577_v48, %v2209_v58  ;;  %v2299_v28 = vadd.f32 %v581_v8, %v2213_v41  ;;  %v2302_v1 = vadd.f32 %v580_v49, %v2216_v30  ;;  %v622_v42 = vmul.f32 %v621_v25, %v1923_v18 }
  0x67   : >> { %v623_v57 = vmul.f32 %v621_v25, %v1925_v19  ;;  %v624_v45 = vmul.f32 %v621_v25, %v1927_v20  ;;  %v625_v34 = vmul.f32 %v621_v25, %v1931_v22  ;;  %v626_v40 = vmul.f32 %v621_v25, %v1933_v23 }
  0x68   : >> { %v627_v15 = vmul.f32 %v621_v25, %v1935_v24  ;;  %v628_v58 = vmul.f32 %v621_v25, %v1938_v26  ;;  %v629_v41 = vmul.f32 %v621_v25, %v2776_v0  ;;  %v630_v31 = vmul.f32 %v621_v25, %v2777_v50 }
  0x69   : >> { %v631_v30 = vmul.f32 %v621_v25, %v2778_v52  ;;  %v632_v14 = vmul.f32 %v621_v25, %v2779_v54  ;;  %v633_v13 = vmul.f32 %v621_v25, %v2780_v9  ;;  %v634_v32 = vmul.f32 %v621_v25, %v2781_v6 }
  0x6a   : >> { %v635_v10 = vmul.f32 %v621_v25, %v2786_v56  ;;  %v636_v61 = vmul.f32 %v621_v25, %v2787_v44  ;;  %v637_v48 = vmul.f32 %v621_v25, %v2788_v62  ;;  %v638_v21 = vmul.f32 %v621_v25, %v2789_v43  ;;  %v2790_v56 = vld [vmem:[#allocation8_spill] sm:$0xff]  ;;  %v2791_v44 = vld [vmem:[#allocation18_spill] sm:$0xff] }
  0x6b   : >> { %v659_v49 = vrot.slane %v622_v42, 4  ;;  %v660_v39 = vrot.slane %v623_v57, 4  ;;  %v662_v27 = vrot.slane %v624_v45, 4  ;;  %v2322_v29 = vmul.f32 %v621_v25, %v2772_v5 }
  0x6c   : >> { %v663_v51 = vrot.slane %v625_v34, 4  ;;  %v665_v55 = vrot.slane %v626_v40, 4  ;;  %v666_v33 = vrot.slane %v627_v15, 4  ;;  %v668_v8 = vrot.slane %v628_v58, 4 }
  0x6d   : >> { %v669_v59 = vrot.slane %v629_v41, 4  ;;  %v671_v6 = vrot.slane %v630_v31, 4  ;;  %v672_v9 = vrot.slane %v631_v30, 4  ;;  %v2325_v54 = vadd.f32 %v584_v2, %v2790_v56 }
  0x6e   : >> { %v2328_v62 = vadd.f32 %v583_v53, %v2791_v44  ;;  %v674_v43 = vrot.slane %v632_v14, 4  ;;  %v675_v42 = vrot.slane %v633_v13, 4  ;;  %v661_v57 = vsel %vm658_vm3, %v659_v49, %v660_v39  ;;  %v2792_v49 = vld [vmem:[#allocation13_spill] sm:$0xff] }
  0x6f   : >> { %v664_v25 = vsel %vm658_vm3, %v662_v27, %v663_v51  ;;  %v677_v45 = vrot.slane %v634_v32, 4  ;;  %v678_v34 = vrot.slane %v635_v10, 4  ;;  %v667_v40 = vsel %vm658_vm3, %v665_v55, %v666_v33  ;;  %v2793_v27 = vld [vmem:[#allocation14_spill] sm:$0xff] }
  0x70   : >> { %v680_v15 = vrot.slane %v636_v61, 4  ;;  %v681_v58 = vrot.slane %v637_v48, 4  ;;  %v683_v41 = vrot.slane %v638_v21, 4  ;;  %v670_v31 = vsel %vm658_vm3, %v668_v8, %v669_v59 }
  0x71   : >> { %v673_v2 = vsel %vm658_vm3, %v671_v6, %v672_v9  ;;  %v676_v53 = vsel %vm658_vm3, %v674_v43, %v675_v42  ;;  %v684_v30 = vrot.slane %v2322_v29, 4  ;;  %v679_v14 = vsel %vm658_vm3, %v677_v45, %v678_v34 }
  0x72   : >> { %v682_v13 = vsel %vm658_vm3, %v680_v15, %v681_v58  ;;  %v2340_v32 = vadd.f32 %v661_v57, %v2256_v3  ;;  %v2343_v56 = vadd.f32 %v660_v39, %v2260_v36  ;;  %v2347_v44 = vadd.f32 %v664_v25, %v2263_v63  ;;  %v2797_v25 = vld [vmem:[#allocation19_spill] sm:$0xff] }
  0x73   : >> { %v685_v10 = vsel %vm658_vm3, %v683_v41, %v684_v30  ;;  %v2350_v6 = vadd.f32 %v663_v51, %v2266_v60  ;;  %v2353_v61 = vadd.f32 %v667_v40, %v2269_v16  ;;  %v2356_v48 = vadd.f32 %v666_v33, %v2272_v17  ;;  %v2794_v51 = vld [vmem:[#allocation15_spill] sm:$0xff]  ;;  %v2795_v33 = vld [vmem:[#allocation16_spill] sm:$0xff] }
  0x74   : >> { %v2359_v3 = vadd.f32 %v670_v31, %v2275_v11  ;;  %v2362_v36 = vadd.f32 %v669_v59, %v2278_v35  ;;  %v2365_v43 = vadd.f32 %v673_v2, %v2281_v7  ;;  %v2368_v63 = vadd.f32 %v672_v9, %v2284_v4 }
  0x75   : >> { %v2371_v60 = vadd.f32 %v676_v53, %v2287_v12  ;;  %v2374_v16 = vadd.f32 %v675_v42, %v2290_v46  ;;  %v2377_v17 = vadd.f32 %v679_v14, %v2293_v47  ;;  %v2380_v11 = vadd.f32 %v678_v34, %v2296_v38  ;;  %v2796_v42 = vld [vmem:[#allocation17_spill] sm:$0xff]  ;;  %v2798_v34 = vld [vmem:[#allocation20_spill] sm:$0xff] }
  0x76   : >> { %v2383_v59 = vadd.f32 %v682_v13, %v2299_v28  ;;  %v2386_v35 = vadd.f32 %v681_v58, %v2302_v1  ;;  %v723_v9 = vmul.f32 %v2244_v37, %v1923_v18  ;;  %v724_v7 = vmul.f32 %v2244_v37, %v1925_v19 }
  0x77   : >> { %v725_v4 = vmul.f32 %v2244_v37, %v1927_v20  ;;  %v726_v12 = vmul.f32 %v2244_v37, %v1931_v22  ;;  %v727_v46 = vmul.f32 %v2244_v37, %v1933_v23  ;;  %v728_v47 = vmul.f32 %v2244_v37, %v1935_v24 }
  0x78   : >> { %v729_v38 = vmul.f32 %v2244_v37, %v1938_v26  ;;  %v730_v28 = vmul.f32 %v2244_v37, %v2776_v0  ;;  %v731_v1 = vmul.f32 %v2244_v37, %v2777_v50  ;;  %v732_v21 = vmul.f32 %v2244_v37, %v2778_v52 }
  0x79   : >> { %v733_v39 = vmul.f32 %v2244_v37, %v2792_v49  ;;  %v734_v29 = vmul.f32 %v2244_v37, %v2793_v27  ;;  %v735_v55 = vmul.f32 %v2244_v37, %v2794_v51  ;;  %v736_v8 = vmul.f32 %v2244_v37, %v2795_v33 }
  0x7a   : >> { %v737_v57 = vmul.f32 %v2244_v37, %v2796_v42  ;;  %v738_v45 = vmul.f32 %v2244_v37, %v2797_v25  ;;  %v739_v40 = vmul.f32 %v2244_v37, %v2798_v34  ;;  %v740_v15 = vmul.f32 %v2244_v37, %v2772_v5 }
  0x7b   : >> { %v760_v58 = vrot.slane %v723_v9, 5  ;;  %v761_v41 = vrot.slane %v724_v7, 5  ;;  %v763_v31 = vrot.slane %v725_v4, 5  ;;  %v764_v2 = vrot.slane %v726_v12, 5 }
  0x7c   : >> { %v766_v53 = vrot.slane %v727_v46, 5  ;;  %v767_v14 = vrot.slane %v728_v47, 5  ;;  %v769_v13 = vrot.slane %v729_v38, 5  ;;  %v770_v33 = vrot.slane %v730_v28, 5 }
  0x7d   : >> { %v772_v51 = vrot.slane %v731_v1, 5  ;;  %v773_v42 = vrot.slane %v732_v21, 5  ;;  %v720_v27 = vadd.f32 %v685_v10, %v2325_v54  ;;  %v721_v25 = vadd.f32 %v684_v30, %v2328_v62 }
  0x7e   : >> { %v775_v49 = vrot.slane %v733_v39, 5  ;;  %v776_v34 = vrot.slane %v734_v29, 5  ;;  %v762_v52 = vsel %vm759_vm4, %v760_v58, %v761_v41  ;;  %v765_v37 = vsel %vm759_vm4, %v763_v31, %v764_v2 }
  0x7f   : >> { %v778_v9 = vrot.slane %v735_v55, 5  ;;  %v779_v7 = vrot.slane %v736_v8, 5  ;;  %v768_v4 = vsel %vm759_vm4, %v766_v53, %v767_v14  ;;  %v781_v12 = vrot.slane %v737_v57, 5 }
  0x80   : >> { %v782_v46 = vrot.slane %v738_v45, 5  ;;  %v784_v47 = vrot.slane %v739_v40, 5  ;;  %v771_v38 = vsel %vm759_vm4, %v769_v13, %v770_v33  ;;  %v774_v28 = vsel %vm759_vm4, %v772_v51, %v773_v42 }
  0x81   : >> { %v777_v54 = vsel %vm759_vm4, %v775_v49, %v776_v34  ;;  %v785_v62 = vrot.slane %v740_v15, 5  ;;  %v780_v30 = vsel %vm759_vm4, %v778_v9, %v779_v7  ;;  %v2435_v1 = vadd.f32 %v762_v52, %v2340_v32  ;;  %v2801_v15 = vld [vmem:[#allocation13_spill] sm:$0xff] }
  0x82   : >> { %v783_v10 = vsel %vm759_vm4, %v781_v12, %v782_v46  ;;  %v2438_v21 = vadd.f32 %v761_v41, %v2343_v56  ;;  %v2442_v29 = vadd.f32 %v765_v37, %v2347_v44  ;;  %v2445_v51 = vadd.f32 %v764_v2, %v2350_v6  ;;  %v2802_v41 = vld [vmem:[#allocation14_spill] sm:$0xff]  ;;  %v2803_v2 = vld [vmem:[#allocation15_spill] sm:$0xff]  ;;  %v2805_v37 = vld [vmem:[#allocation17_spill] sm:$0xff] }
  0x83   : >> { %v786_v39 = vsel %vm759_vm4, %v784_v47, %v785_v62  ;;  %v2448_v49 = vadd.f32 %v768_v4, %v2353_v61  ;;  %v2451_v55 = vadd.f32 %v767_v14, %v2356_v48  ;;  %v2454_v52 = vadd.f32 %v771_v38, %v2359_v3  ;;  %v2804_v14 = vld [vmem:[#allocation16_spill] sm:$0xff] }
  0x84   : >> { %v2457_v32 = vadd.f32 %v770_v33, %v2362_v36  ;;  %v2460_v56 = vadd.f32 %v774_v28, %v2365_v43  ;;  %v2463_v44 = vadd.f32 %v773_v42, %v2368_v63  ;;  %v2466_v6 = vadd.f32 %v777_v54, %v2371_v60  ;;  %v2799_v63 = vld [vmem:[#allocation9_spill] sm:$0xff]  ;;  %v2807_v12 = vld [vmem:[#allocation20_spill] sm:$0xff] }
  0x85   : >> { %v2469_v61 = vadd.f32 %v776_v34, %v2374_v16  ;;  %v2472_v48 = vadd.f32 %v780_v30, %v2377_v17  ;;  %v2475_v3 = vadd.f32 %v779_v7, %v2380_v11  ;;  %v2478_v36 = vadd.f32 %v783_v10, %v2383_v59  ;;  %v2800_v34 = vld [vmem:[#allocation12_spill] sm:$0xff]  ;;  %v2806_v7 = vld [vmem:[#allocation19_spill] sm:$0xff] }
  0x86   : >> { %v2481_v43 = vadd.f32 %v782_v46, %v2386_v35  ;;  %v823_v33 = vperm.slane %v2799_v63, 6  ;;  %v2484_v8 = vadd.f32 %v786_v39, %v720_v27  ;;  %v2486_v60 = vadd.f32 %v785_v62, %v721_v25 }
  0x87   : >> { %v2489_v16 = vperm.slane %v2799_v63, 7 }
  0x88   : >> { %v824_v17 = vmul.f32 %v823_v33, %v1923_v18  ;;  %v825_v11 = vmul.f32 %v823_v33, %v1925_v19  ;;  %v826_v59 = vmul.f32 %v823_v33, %v1927_v20  ;;  %v827_v42 = vmul.f32 %v823_v33, %v1931_v22 }
  0x89   : >> { %v828_v35 = vmul.f32 %v823_v33, %v1933_v23  ;;  %v829_v57 = vmul.f32 %v823_v33, %v1935_v24  ;;  %v830_v27 = vmul.f32 %v823_v33, %v1938_v26  ;;  %v831_v25 = vmul.f32 %v823_v33, %v2776_v0 }
  0x8a   : >> { %v832_v45 = vmul.f32 %v823_v33, %v2777_v50  ;;  %v833_v40 = vmul.f32 %v823_v33, %v2800_v34  ;;  %v834_v58 = vmul.f32 %v823_v33, %v2801_v15  ;;  %v835_v31 = vmul.f32 %v823_v33, %v2802_v41 }
  0x8b   : >> { %v836_v53 = vmul.f32 %v823_v33, %v2803_v2  ;;  %v837_v13 = vmul.f32 %v823_v33, %v2804_v14  ;;  %v838_v9 = vmul.f32 %v823_v33, %v2805_v37  ;;  %v839_v4 = vmul.f32 %v823_v33, %v2806_v7 }
  0x8c   : >> { %v840_v46 = vmul.f32 %v823_v33, %v2807_v12  ;;  %v841_v47 = vmul.f32 %v823_v33, %v2772_v5  ;;  %v861_v38 = vrot.slane %v824_v17, 6  ;;  %v862_v28 = vrot.slane %v825_v11, 6 }
  0x8d   : >> { %v864_v54 = vrot.slane %v826_v59, 6  ;;  %v865_v62 = vrot.slane %v827_v42, 6  ;;  %v867_v30 = vrot.slane %v828_v35, 6  ;;  %v868_v10 = vrot.slane %v829_v57, 6 }
  0x8e   : >> { %v863_v39 = vsel %vm860_vm5, %v861_v38, %v862_v28  ;;  %v870_v63 = vrot.slane %v830_v27, 6  ;;  %v871_v2 = vrot.slane %v831_v25, 6  ;;  %v873_v41 = vrot.slane %v832_v45, 6 }
  0x8f   : >> { %v866_v14 = vsel %vm860_vm5, %v864_v54, %v865_v62  ;;  %v869_v37 = vsel %vm860_vm5, %v867_v30, %v868_v10  ;;  %v874_v7 = vrot.slane %v833_v40, 6  ;;  %v876_v15 = vrot.slane %v834_v58, 6 }
  0x90   : >> { %v872_v12 = vsel %vm860_vm5, %v870_v63, %v871_v2  ;;  %v877_v33 = vrot.slane %v835_v31, 6  ;;  %v879_v17 = vrot.slane %v836_v53, 6  ;;  %v880_v11 = vrot.slane %v837_v13, 6 }
  0x91   : >> { %v875_v59 = vsel %vm860_vm5, %v873_v41, %v874_v7  ;;  %v882_v42 = vrot.slane %v838_v9, 6  ;;  %v883_v35 = vrot.slane %v839_v4, 6  ;;  %v885_v57 = vrot.slane %v840_v46, 6  ;;  %v2810_v9 = vld [vmem:[#allocation15_spill] sm:$0xff]  ;;  %v2812_v4 = vld [vmem:[#allocation17_spill] sm:$0xff]  ;;  %v2814_v46 = vld [vmem:[#allocation20_spill] sm:$0xff] }
  0x92   : >> { %v878_v27 = vsel %vm860_vm5, %v876_v15, %v877_v33  ;;  %v881_v25 = vsel %vm860_vm5, %v879_v17, %v880_v11  ;;  %v886_v45 = vrot.slane %v841_v47, 6  ;;  %v2517_v38 = vadd.f32 %v863_v39, %v2435_v1 }
  0x93   : >> { %v884_v40 = vsel %vm860_vm5, %v882_v42, %v883_v35  ;;  %v2521_v58 = vadd.f32 %v862_v28, %v2438_v21  ;;  %v2524_v31 = vadd.f32 %v866_v14, %v2442_v29  ;;  %v2527_v41 = vadd.f32 %v865_v62, %v2445_v51 }
  0x94   : >> { %v887_v15 = vsel %vm860_vm5, %v885_v57, %v886_v45  ;;  %v910_v53 = vadd.f32 %v869_v37, %v2448_v49  ;;  %v2532_v13 = vadd.f32 %v868_v10, %v2451_v55  ;;  %v2535_v1 = vadd.f32 %v872_v12, %v2454_v52  ;;  %v2809_v37 = vld [vmem:[#allocation14_spill] sm:$0xff]  ;;  %v2813_v12 = vld [vmem:[#allocation19_spill] sm:$0xff] }
  0x95   : >> { %v2538_v21 = vadd.f32 %v871_v2, %v2457_v32  ;;  %v2541_v29 = vadd.f32 %v875_v59, %v2460_v56  ;;  %v2544_v51 = vadd.f32 %v874_v7, %v2463_v44  ;;  %v2547_v14 = vadd.f32 %v878_v27, %v2466_v6  ;;  %v2808_v2 = vld [vmem:[#allocation13_spill] sm:$0xff]  ;;  %v2811_v7 = vld [vmem:[#allocation16_spill] sm:$0xff] }
  0x96   : >> { %v2550_v49 = vadd.f32 %v877_v33, %v2469_v61  ;;  %v2553_v55 = vadd.f32 %v881_v25, %v2472_v48  ;;  %v2556_v52 = vadd.f32 %v880_v11, %v2475_v3  ;;  %v2559_v32 = vadd.f32 %v884_v40, %v2478_v36 }
  0x97   : >> { %v2562_v56 = vadd.f32 %v883_v35, %v2481_v43  ;;  %v2565_v44 = vadd.f32 %v887_v15, %v2484_v8  ;;  %v2568_v6 = vadd.f32 %v886_v45, %v2486_v60  ;;  %v925_v61 = vmul.f32 %v2489_v16, %v1923_v18 }
  0x98   : >> { %v926_v48 = vmul.f32 %v2489_v16, %v1925_v19  ;;  %v927_v3 = vmul.f32 %v2489_v16, %v1927_v20  ;;  %v928_v36 = vmul.f32 %v2489_v16, %v1931_v22  ;;  %v929_v43 = vmul.f32 %v2489_v16, %v1933_v23 }
  0x99   : >> { %v930_v8 = vmul.f32 %v2489_v16, %v1935_v24  ;;  %v931_v60 = vmul.f32 %v2489_v16, %v1938_v26  ;;  %v932_v18 = vmul.f32 %v2489_v16, %v2776_v0  ;;  %v933_v19 = vmul.f32 %v2489_v16, %v2777_v50 }
  0x9a   : >> { %v934_v20 = vmul.f32 %v2489_v16, %v2800_v34  ;;  %v935_v22 = vmul.f32 %v2489_v16, %v2808_v2  ;;  %v936_v23 = vmul.f32 %v2489_v16, %v2809_v37  ;;  %v937_v24 = vmul.f32 %v2489_v16, %v2810_v9 }
  0x9b   : >> { %v938_v26 = vmul.f32 %v2489_v16, %v2811_v7  ;;  %v939_v0 = vmul.f32 %v2489_v16, %v2812_v4  ;;  %v940_v50 = vmul.f32 %v2489_v16, %v2813_v12  ;;  %v941_v34 = vmul.f32 %v2489_v16, %v2814_v46 }
  0x9c   : >> { %v942_v47 = vmul.f32 %v2489_v16, %v2772_v5  ;;  %v962_v28 = vrot.slane %v925_v61, 7  ;;  %v963_v54 = vrot.slane %v926_v48, 7  ;;  %v965_v62 = vrot.slane %v927_v3, 7 }
  0x9d   : >> { %v966_v30 = vrot.slane %v928_v36, 7  ;;  %v968_v10 = vrot.slane %v929_v43, 7  ;;  %v969_v39 = vrot.slane %v930_v8, 7  ;;  %v971_v63 = vrot.slane %v931_v60, 7 }
  0x9e   : >> { %v964_v33 = vsel %vm961_vm6, %v962_v28, %v963_v54  ;;  %v972_v17 = vrot.slane %v932_v18, 7  ;;  %v974_v11 = vrot.slane %v933_v19, 7  ;;  %v975_v59 = vrot.slane %v934_v20, 7 }
  0x9f   : >> { %v967_v42 = vsel %vm961_vm6, %v965_v62, %v966_v30  ;;  %v970_v35 = vsel %vm961_vm6, %v968_v10, %v969_v39  ;;  %v977_v57 = vrot.slane %v935_v22, 7  ;;  %v978_v27 = vrot.slane %v936_v23, 7 }
  0xa0   : >> { %v973_v5 = vsel %vm961_vm6, %v971_v63, %v972_v17  ;;  %v976_v16 = vsel %vm961_vm6, %v974_v11, %v975_v59  ;;  %v980_v25 = vrot.slane %v937_v24, 7  ;;  %v981_v45 = vrot.slane %v938_v26, 7 }
  0xa1   : >> { %v979_v40 = vsel %vm961_vm6, %v977_v57, %v978_v27  ;;  %v983_v15 = vrot.slane %v939_v0, 7  ;;  %v984_v61 = vrot.slane %v940_v50, 7  ;;  %v986_v48 = vrot.slane %v941_v34, 7 }
  0xa2   : >> { %v982_v3 = vsel %vm961_vm6, %v980_v25, %v981_v45  ;;  %v987_v36 = vrot.slane %v942_v47, 7  ;;  %v1007_v43 = vadd.f32 %v964_v33, %v2517_v38   ;;  %v1008_v60 = vadd.f32 %v963_v54, %v2521_v58  }
  0xa3   : >> { %v985_v8 = vsel %vm961_vm6, %v983_v15, %v984_v61  ;;  %v1009_v18 = vadd.f32 %v967_v42, %v2524_v31   ;;  %v1010_v19 = vadd.f32 %v966_v30, %v2527_v41   ;;  %v1011_v20 = vadd.f32 %v970_v35, %v910_v53  }
  0xa4   : >> { %v988_v2 = vsel %vm961_vm6, %v986_v48, %v987_v36  ;;  %v1012_v22 = vadd.f32 %v969_v39, %v2532_v13   ;;  %v1013_v37 = vadd.f32 %v973_v5, %v2535_v1   ;;  %v1014_v23 = vadd.f32 %v972_v17, %v2538_v21   ;;  %1025 = vst [vmem:[%s1838_s6] sm:$0xff] (%p2633_p0), %v1007_v43 }
  0xa5   : >> { %v1015_v24 = vadd.f32 %v976_v16, %v2541_v29   ;;  %v1016_v38 = vadd.f32 %v975_v59, %v2544_v51   ;;  %v1017_v58 = vadd.f32 %v979_v40, %v2547_v14   ;;  %v1018_v26 = vadd.f32 %v978_v27, %v2550_v49   ;;  %1026 = vst [vmem:[%s1838_s6 + $0x8] sm:$0x1] (%p2633_p0), %v1008_v60 }
  0xa6   : >> { %v1019_v31 = vadd.f32 %v982_v3, %v2553_v55   ;;  %v1020_v41 = vadd.f32 %v981_v45, %v2556_v52   ;;  %v1021_v53 = vadd.f32 %v985_v8, %v2559_v32   ;;  %v1022_v50 = vadd.f32 %v984_v61, %v2562_v56   ;;  %1027 = vst [vmem:[%s1838_s6 + $0x10] sm:$0xff] (%p2633_p0), %v1009_v18 }
  0xa7   : >> { %v1023_v46 = vadd.f32 %v988_v2, %v2565_v44   ;;  %v1024_v21 = vadd.f32 %v987_v36, %v2568_v6   ;;  %v2822_v6 = vmov %v1018_v26  ;;  %v2823_v7 = vmov %v1017_v58  ;;  %238 = sbr.rel (!%p2633_p0) target bundleno = 40 (0x28), region = 90  ;;  %1028 = vst [vmem:[%s1838_s6 + $0x18] sm:$0x1] (%p2633_p0), %v1010_v19 }
  0xa8   : >> { %v2818_v2 = vmov %v1022_v50  ;;  %v2819_v3 = vmov %v1021_v53  ;;  %v2820_v4 = vmov %v1020_v41  ;;  %v2821_v5 = vmov %v1019_v31  ;;  %1029 = vst [vmem:[%s1838_s6 + $0x20] sm:$0xff] (%p2633_p0), %v1011_v20 }
  0xa9   : >> { %v2816_v0 = vmov %v1024_v21  ;;  %v2817_v1 = vmov %v1023_v46  ;;  %v2824_v8 = vmov %v1016_v38  ;;  %v2825_v9 = vmov %v1015_v24  ;;  %1030 = vst [vmem:[%s1838_s6 + $0x28] sm:$0x1] (%p2633_p0), %v1012_v22 }
  0xaa   : >> { %v2826_v10 = vmov %v1014_v23  ;;  %v2827_v11 = vmov %v1013_v37  ;;  %v2828_v12 = vmov %v1012_v22  ;;  %v2829_v13 = vmov %v1011_v20  ;;  %1031 = vst [vmem:[%s1838_s6 + $0x30] sm:$0xff] (%p2633_p0), %v1013_v37 }
  0xab   : >> { %v2830_v14 = vmov %v1010_v19  ;;  %v2831_v15 = vmov %v1009_v18  ;;  %v2832_v16 = vmov %v1008_v60  ;;  %v2833_v17 = vmov %v1007_v43  ;;  %1032 = vst [vmem:[%s1838_s6 + $0x38] sm:$0x1] (%p2633_p0), %v1014_v23 }
  0xac   : > { %1033 = vst [vmem:[%s1838_s6 + $0x40] sm:$0xff] %v1015_v24 }
  0xad   : > { %1034 = vst [vmem:[%s1838_s6 + $0x48] sm:$0x1] %v1016_v38 }
  0xae   : > { %1035 = vst [vmem:[%s1838_s6 + $0x50] sm:$0xff] %v1017_v58 }
  0xaf   : > { %1036 = vst [vmem:[%s1838_s6 + $0x58] sm:$0x1] %v1018_v26 }
  0xb0   : > { %1037 = vst [vmem:[%s1838_s6 + $0x60] sm:$0xff] %v1019_v31 }
  0xb1   : > { %1038 = vst [vmem:[%s1838_s6 + $0x68] sm:$0x1] %v1020_v41 }
  0xb2   : > { %1039 = vst [vmem:[%s1838_s6 + $0x70] sm:$0xff] %v1021_v53 }
  0xb3   : > { %1040 = vst [vmem:[%s1838_s6 + $0x78] sm:$0x1] %v1022_v50 }
  0xb4   : > { %1041 = vst [vmem:[%s1838_s6 + $0x80] sm:$0xff] %v1023_v46 }
  0xb5   : > { %1042 = vst [vmem:[%s1838_s6 + $0x88] sm:$0x1] %v1024_v21 }
  0xb6 PF: > { %s18_s14 = sadd.s32 1, %s1647_s14   ;;  %s2834_s9 = smov %s1631_s10 }
  0xb7   : > { %p15_p1 = scmp.ge.s32.totalorder %s18_s14, 4   ;;  %s2835_s10 = smov %s1635_s11 }
  0xb8   : > { %s2836_s11 = smov %s1791_s21  ;;  %s2837_s12 = smov %s1643_s13 }
  0xb9   : > { %s2838_s13 = smov %s2840_s16  ;;  %17 = sbr.rel (!%p15_p1) target bundleno = 6 (0x6), region = 101 }
  0xbe   :  { %1070 = vsyncpa [#allocation3], 1 }
  0xbf   :  { %1072 = vsyncpa [#allocation3 + $0x1], 1 }
  0xc0   :  { %1073 = vsyncpa [#allocation5], 1 }
  0xc1   :  { %1075 = vsyncpa [#allocation5 + $0x1], 1 }

</bundles_post_ra>
